<compile_context>
chip_gen: v6e
topology: v6e:2x2x1
jax: 0.10.0
libtpu: 0.0.40
codegen_flags: <defaults>
</compile_context>

<pallas_src>
import functools
import math

import jax
import jax.numpy as jnp
from jax.experimental import pallas as pl
from jax.experimental.pallas import tpu as pltpu


# ----------------------------------------------------------------------------
# Kernel
# ----------------------------------------------------------------------------
def _layer_norm(x, gamma, beta, eps=1e-5):
    mu = jnp.mean(x, axis=-1, keepdims=True)
    var = jnp.mean((x - mu) ** 2, axis=-1, keepdims=True)
    return (x - mu) * jax.lax.rsqrt(var + eps) * gamma + beta


def encoder_kernel(x_ref, we_ref, be_ref, pe_ref,
                   wqkv_ref, bqkv_ref, wo_ref, bo_ref,
                   g1_ref, be1_ref, w1_ref, b1_ref,
                   w2_ref, b2_ref, g2_ref, be2_ref,
                   o_ref,
                   h_ref,
                   *, batch_tile, seq, head_num, atten_dim):
    """Fused DataEncoder for one batch tile.

    Grid = (batch_tiles [parallel], blocks [arbitrary, sequential state carry]).
    x_ref  : (Mt, F) bf16      we_ref : (F, D) bf16      be_ref : (1, D) f32
    pe_ref : (T, D) f32 (broadcast over the batch tile)
    per-block weights : 2-D VMEM tiles (stacked block axis squeezed by BlockSpec)
    o_ref  : (Mt, D) f32       h_ref : (Mt, D) f32 scratch (resident activation)
    """
    blk = pl.program_id(1)
    Mt = batch_tile * seq
    A = atten_dim
    HA = head_num * atten_dim

    # ---- block 0 prologue: data embedding + positional embedding --------------
    @pl.when(blk == 0)
    def _():
        y = jnp.dot(x_ref[...], we_ref[...],
                    preferred_element_type=jnp.float32)            # (Mt, D)
        y = y + be_ref[...]
        D = y.shape[-1]
        # broadcast (T, D) positional encoding over the batch tile (leading-dim
        # reshapes only; lane dim untouched)
        h_ref[...] = (y.reshape(batch_tile, seq, D) + pe_ref[...]).reshape(Mt, D)

    x = h_ref[...]                                                  # (Mt, D) f32
    xb = x.astype(jnp.bfloat16)

    # ---- multi-head self-attention ---------------------------------------------
    # Fused QKV: one wide-N MXU matmul, one bias add.
    qkv = jnp.dot(xb, wqkv_ref[...],
                  preferred_element_type=jnp.float32) + bqkv_ref[...]   # (Mt, 3*HA)
    qkv_b = qkv.astype(jnp.bfloat16)           # single cast shared by all heads

    scale = 1.0 / math.sqrt(atten_dim)
    attn = jnp.zeros_like(x)                   # f32 output-projection accumulator
    for h in range(head_num):                  # short static unroll
        qh = qkv_b[:, h * A:(h + 1) * A].reshape(batch_tile, seq, A)
        kh = qkv_b[:, HA + h * A:HA + (h + 1) * A].reshape(batch_tile, seq, A)
        vh = qkv_b[:, 2 * HA + h * A:2 * HA + (h + 1) * A].reshape(batch_tile, seq, A)

        s = jnp.einsum('bqa,bka->bqk', qh, kh,
                       preferred_element_type=jnp.float32) * scale      # (b,T,T)
        s = s - jnp.max(s, axis=-1, keepdims=True)
        p = jnp.exp(s)
        # approx reciprocal: EUP slot, ~free (inference-grade numerics)
        p = p * pl.reciprocal(jnp.sum(p, axis=-1, keepdims=True), approx=True)
        oh = jnp.einsum('bqk,bka->bqa', p.astype(jnp.bfloat16), vh,
                        preferred_element_type=jnp.float32)             # (b,T,A)

        # accumulate this head's output projection in f32 (no ctx scratch,
        # no masked lane-width-A stores); wo slice is sublane-aligned (A % 8 == 0)
        attn = attn + jnp.dot(oh.reshape(Mt, A).astype(jnp.bfloat16),
                              wo_ref[h * A:(h + 1) * A, :],
                              preferred_element_type=jnp.float32)
    attn = attn + bo_ref[...]

    h1 = _layer_norm(x + attn, g1_ref[...], be1_ref[...])

    # ---- feed-forward (single live wide temporary) ------------------------------
    ff = jnp.maximum(
        jnp.dot(h1.astype(jnp.bfloat16), w1_ref[...],
                preferred_element_type=jnp.float32) + b1_ref[...],
        0.0).astype(jnp.bfloat16)                                   # f32 temp dies here
    ff = jnp.dot(ff, w2_ref[...],
                 preferred_element_type=jnp.float32) + b2_ref[...]

    h2 = _layer_norm(h1 + ff, g2_ref[...], be2_ref[...])
    h_ref[...] = h2                                                 # carry to next block

    # Output block is indexed by the batch tile only, so it is never revisited
    # after this write (flushed when the batch-tile index advances / grid ends).
    @pl.when(blk == pl.num_programs(1) - 1)
    def _():
        o_ref[...] = h2.astype(o_ref.dtype)


# ----------------------------------------------------------------------------
# Wrapper (single pallas_call for the whole encoder)
# ----------------------------------------------------------------------------
def _const_spec(shape):
    nd = len(shape)
    return pl.BlockSpec(tuple(shape), lambda bt, blk, _nd=nd: (0,) * _nd)


def _stacked_spec(shape):
    # Stacked per-block tensor: leading axis indexed by the block grid axis, squeezed.
    nd = len(shape)
    return pl.BlockSpec((None,) + tuple(shape[1:]),
                        lambda bt, blk, _nd=nd: (blk,) + (0,) * (_nd - 1))


def _vmem_limit_bytes():
    # ~25% headroom: 48 MiB on v7x (64 MiB/TC), 96 MiB on v5e/v6e (128 MiB).
    try:
        cap = pltpu.get_tpu_info().vmem_capacity_bytes
        return int(cap * 3 // 4)
    except Exception:
        return 48 * 1024 * 1024


def _pick_batch_tile(B, T, D, ff_dim, budget_bytes=8 << 20):
    # rough per-batch live f32 footprint: resident h + widest FFN temp + attn temp
    per_batch = T * (2 * D + ff_dim) * 4
    tb = max(1, min(B, budget_bytes // max(per_batch, 1)))
    while B % tb != 0:
        tb -= 1
    return tb


def prepare_encoder_params(params, head_num, atten_dim):
    """One-time host-side prep: stack per-block weights, fuse QKV, cast to bf16.

    Call once and reuse; the per-call wrapper then launches only the pallas_call.
    """
    blocks = params["blocks"]

    def stack(key, bf16):
        a = jnp.stack([b[key] for b in blocks])
        return a.astype(jnp.bfloat16) if bf16 else a

    wqkv = jnp.stack([jnp.concatenate([b["wq"], b["wk"], b["wv"]], axis=1)
                      for b in blocks]).astype(jnp.bfloat16)          # (L, D, 3*HA)
    bqkv = jnp.stack([jnp.concatenate([b["bq"], b["bk"], b["bv"]], axis=1)
                      for b in blocks])                               # (L, 1, 3*HA)

    return {
        "w_emb": params["w_emb"].astype(jnp.bfloat16),
        "b_emb": params["b_emb"],
        "pe": params["pe"],                                          # (T, D)
        "wqkv": wqkv, "bqkv": bqkv,
        "wo": stack("wo", True), "bo": stack("bo", False),
        "g1": stack("g1", False), "be1": stack("be1", False),
        "w1": stack("w1", True), "b1": stack("b1", False),
        "w2": stack("w2", True), "b2": stack("b2", False),
        "g2": stack("g2", False), "be2": stack("be2", False),
    }


def data_encoder_forward(x, prep, head_num, atten_dim, batch_tile=None):
    B, T, F = x.shape
    D = prep["w_emb"].shape[1]
    n_blocks = prep["wqkv"].shape[0]
    HA = head_num * atten_dim
    ff_dim = prep["w1"].shape[-1]

    if batch_tile is None:
        batch_tile = _pick_batch_tile(B, T, D, ff_dim)
    assert B % batch_tile == 0, "batch_tile must divide batch"
    n_bt = B // batch_tile
    Mt = batch_tile * T
    M = B * T

    x2d = x.reshape(M, F).astype(jnp.bfloat16)       # bf16 input DMA (halved)

    stacked_keys = ["wqkv", "bqkv", "wo", "bo", "g1", "be1",
                    "w1", "b1", "w2", "b2", "g2", "be2"]
    stacked = [prep[k] for k in stacked_keys]

    in_specs = [
        pl.BlockSpec((Mt, F), lambda bt, blk: (bt, 0)),
        _const_spec(prep["w_emb"].shape),
        _const_spec(prep["b_emb"].shape),
        _const_spec(prep["pe"].shape),
    ] + [_stacked_spec(a.shape) for a in stacked]

    out_spec = pl.BlockSpec((Mt, D), lambda bt, blk: (bt, 0))

    # Advisory cost estimate for the XLA scheduler.
    flops_block = (2 * M * D * 3 * HA                          # fused QKV
                   + 2 * B * head_num * T * T * atten_dim * 2  # scores + PV
                   + 2 * M * HA * D                            # output projection
                   + 2 * M * D * ff_dim * 2)                   # FFN
    flops = n_blocks * flops_block + 2 * M * F * D
    transcendentals = n_blocks * B * head_num * T * T
    bytes_accessed = int(
        x2d.size * x2d.dtype.itemsize
        + prep["w_emb"].size * 2 + prep["b_emb"].size * 4 + prep["pe"].size * 4
        + M * D * 4
        + sum(a.size * a.dtype.itemsize for a in stacked))

    out2d = pl.pallas_call(
        functools.partial(encoder_kernel, batch_tile=batch_tile, seq=T,
                          head_num=head_num, atten_dim=atten_dim),
        out_shape=jax.ShapeDtypeStruct((M, D), jnp.float32),
        grid=(n_bt, n_blocks),
        in_specs=in_specs,
        out_specs=out_spec,
        scratch_shapes=[
            pltpu.VMEM((Mt, D), jnp.float32),      # resident activation (per core)
        ],
        compiler_params=pltpu.CompilerParams(
            # batch tiles independent (megacore on v7x); blocks sequential (state carry)
            dimension_semantics=("parallel", "arbitrary"),
            vmem_limit_bytes=_vmem_limit_bytes(),
        ),
        cost_estimate=pl.CostEstimate(flops=int(flops),
                                      transcendentals=int(transcendentals),
                                      bytes_accessed=int(bytes_accessed)),
    )(x2d, prep["w_emb"], prep["b_emb"], prep["pe"], *stacked)

    return out2d.reshape(B, T, D)


# ----------------------------------------------------------------------------
# Deterministic parameter init (shapes implied by __init__)
# ----------------------------------------------------------------------------
def init_params(key, window_size, model_dim, ff_dim, atten_dim,
                feature_num, block_num, head_num):
    def glorot(k, shape):
        lim = math.sqrt(6.0 / (shape[0] + shape[-1]))
        return jax.random.uniform(k, shape, jnp.float32, -lim, lim)

    keys = jax.random.split(key, 1 + block_num)
    params = {
        "w_emb": glorot(keys[0], (feature_num, model_dim)),
        "b_emb": jnp.zeros((1, model_dim), jnp.float32),
    }

    # sinusoidal position embedding (T, D); assumes even model_dim
    pos = jnp.arange(window_size, dtype=jnp.float32)[:, None]
    div = jnp.exp(jnp.arange(0, model_dim, 2, dtype=jnp.float32)
                  * (-math.log(10000.0) / model_dim))
    pe = jnp.zeros((window_size, model_dim), jnp.float32)
    pe = pe.at[:, 0::2].set(jnp.sin(pos * div))
    pe = pe.at[:, 1::2].set(jnp.cos(pos * div))
    params["pe"] = pe

    ha = head_num * atten_dim
    blocks = []
    for i in range(block_num):
        ks = jax.random.split(keys[1 + i], 6)
        blocks.append(dict(
            wq=glorot(ks[0], (model_dim, ha)), bq=jnp.zeros((1, ha), jnp.float32),
            wk=glorot(ks[1], (model_dim, ha)), bk=jnp.zeros((1, ha), jnp.float32),
            wv=glorot(ks[2], (model_dim, ha)), bv=jnp.zeros((1, ha), jnp.float32),
            wo=glorot(ks[3], (ha, model_dim)), bo=jnp.zeros((1, model_dim), jnp.float32),
            g1=jnp.ones((1, model_dim), jnp.float32),
            be1=jnp.zeros((1, model_dim), jnp.float32),
            w1=glorot(ks[4], (model_dim, ff_dim)), b1=jnp.zeros((1, ff_dim), jnp.float32),
            w2=glorot(ks[5], (ff_dim, model_dim)), b2=jnp.zeros((1, model_dim), jnp.float32),
            g2=jnp.ones((1, model_dim), jnp.float32),
            be2=jnp.zeros((1, model_dim), jnp.float32),
        ))
    params["blocks"] = blocks
    return params


# ----------------------------------------------------------------------------
if __name__ == "__main__":
    # small shapes consistent with DataEncoder(window_size, model_dim, ff_dim,
    # atten_dim, feature_num, block_num, head_num, dropout)
    window_size, model_dim, ff_dim = 8, 32, 64
    atten_dim, feature_num, block_num, head_num = 16, 4, 2, 2
    batch = 2

    key = jax.random.PRNGKey(0)
    kx, kp = jax.random.split(key)
    x = jax.random.normal(kx, (batch, window_size, feature_num), jnp.float32)
    params = init_params(kp, window_size, model_dim, ff_dim, atten_dim,
                         feature_num, block_num, head_num)

    prep = prepare_encoder_params(params, head_num, atten_dim)   # one-time host prep

    # batch_tile=1 exercises the (parallel) batch-tile grid axis: grid = (2, block_num)
    out = data_encoder_forward(x, prep, head_num, atten_dim, batch_tile=1)
    out = jax.block_until_ready(out)
    assert out.shape == (batch, window_size, model_dim)
    assert bool(jnp.all(jnp.isfinite(out)))
    print("KERNEL_OK")
</pallas_src>

<mosaic_0001>
module attributes {stable_mosaic.version = 11 : i64} {
  func.func @encoder_kernel(%arg0: i32, %arg1: i32, %arg2: memref<8x4xbf16, #tpu.memory_space<vmem>>, %arg3: memref<4x32xbf16, #tpu.memory_space<vmem>>, %arg4: memref<1x32xf32, #tpu.memory_space<vmem>>, %arg5: memref<8x32xf32, #tpu.memory_space<vmem>>, %arg6: memref<1x32x96xbf16, #tpu.memory_space<vmem>>, %arg7: memref<1x1x96xf32, #tpu.memory_space<vmem>>, %arg8: memref<1x32x32xbf16, #tpu.memory_space<vmem>>, %arg9: memref<1x1x32xf32, #tpu.memory_space<vmem>>, %arg10: memref<1x1x32xf32, #tpu.memory_space<vmem>>, %arg11: memref<1x1x32xf32, #tpu.memory_space<vmem>>, %arg12: memref<1x32x64xbf16, #tpu.memory_space<vmem>>, %arg13: memref<1x1x64xf32, #tpu.memory_space<vmem>>, %arg14: memref<1x64x32xbf16, #tpu.memory_space<vmem>>, %arg15: memref<1x1x32xf32, #tpu.memory_space<vmem>>, %arg16: memref<1x1x32xf32, #tpu.memory_space<vmem>>, %arg17: memref<1x1x32xf32, #tpu.memory_space<vmem>>, %arg18: memref<8x32xf32, #tpu.memory_space<vmem>>, %arg19: memref<8x32xf32, #tpu.memory_space<vmem>>) attributes {dimension_semantics = [#tpu.dimension_semantics<parallel>, #tpu.dimension_semantics<arbitrary>], iteration_bounds = array<i64: 2, 2>, scalar_prefetch = 0 : i64, scratch_operands = 1 : i64, tpu.core_type = #tpu.core_type<tc>, window_params = [{transform_indices = @transform_0, window_bounds = array<i64: 8, 4>}, {pipeline_mode = #tpu.pipeline_mode<synchronous>, transform_indices = @transform_1, window_bounds = array<i64: 4, 32>}, {pipeline_mode = #tpu.pipeline_mode<synchronous>, transform_indices = @transform_2, window_bounds = array<i64: 1, 32>}, {pipeline_mode = #tpu.pipeline_mode<synchronous>, transform_indices = @transform_3, window_bounds = array<i64: 8, 32>}, {transform_indices = @transform_4, window_bounds = array<i64: 1, 32, 96>}, {transform_indices = @transform_5, window_bounds = array<i64: 1, 1, 96>}, {transform_indices = @transform_6, window_bounds = array<i64: 1, 32, 32>}, {transform_indices = @transform_7, window_bounds = array<i64: 1, 1, 32>}, {transform_indices = @transform_8, window_bounds = array<i64: 1, 1, 32>}, {transform_indices = @transform_9, window_bounds = array<i64: 1, 1, 32>}, {transform_indices = @transform_10, window_bounds = array<i64: 1, 32, 64>}, {transform_indices = @transform_11, window_bounds = array<i64: 1, 1, 64>}, {transform_indices = @transform_12, window_bounds = array<i64: 1, 64, 32>}, {transform_indices = @transform_13, window_bounds = array<i64: 1, 1, 32>}, {transform_indices = @transform_14, window_bounds = array<i64: 1, 1, 32>}, {transform_indices = @transform_15, window_bounds = array<i64: 1, 1, 32>}, {transform_indices = @transform_16, window_bounds = array<i64: 8, 32>}]} {
    %c0_i32 = arith.constant 0 : i32
    %0 = arith.cmpi eq, %arg1, %c0_i32 : i32
    %1 = arith.extui %0 : i1 to i32
    %c0_i32_0 = arith.constant 0 : i32
    %2 = arith.cmpi ne, %1, %c0_i32_0 : i32
    scf.if %2 {
      %c0_69 = arith.constant 0 : index
      %c0_70 = arith.constant 0 : index
      %148 = vector.load %arg2[%c0_69, %c0_70] : memref<8x4xbf16, #tpu.memory_space<vmem>>, vector<8x4xbf16>
      %c0_71 = arith.constant 0 : index
      %c0_72 = arith.constant 0 : index
      %149 = vector.load %arg3[%c0_71, %c0_72] : memref<4x32xbf16, #tpu.memory_space<vmem>>, vector<4x32xbf16>
      %cst_73 = arith.constant dense<0.000000e+00> : vector<8x32xf32>
      %150 = tpu.matmul %148, %149, %cst_73 {dimension_numbers = #tpu.dot_dimension_numbers<[1], [0], [0], [1], [0, 0, 1, 1], [], []>} : vector<8x4xbf16>, vector<4x32xbf16>, vector<8x32xf32> -> vector<8x32xf32>
      %c0_74 = arith.constant 0 : index
      %c0_75 = arith.constant 0 : index
      %151 = vector.load %arg4[%c0_74, %c0_75] : memref<1x32xf32, #tpu.memory_space<vmem>>, vector<1x32xf32>
      %152 = vector.broadcast %151 : vector<1x32xf32> to vector<8x32xf32>
      %153 = arith.addf %150, %152 : vector<8x32xf32>
      %154 = vector.shape_cast %153 : vector<8x32xf32> to vector<1x8x32xf32>
      %c0_76 = arith.constant 0 : index
      %c0_77 = arith.constant 0 : index
      %155 = vector.load %arg5[%c0_76, %c0_77] : memref<8x32xf32, #tpu.memory_space<vmem>>, vector<8x32xf32>
      %156 = vector.shape_cast %155 : vector<8x32xf32> to vector<1x8x32xf32>
      %157 = arith.addf %154, %156 : vector<1x8x32xf32>
      %158 = vector.shape_cast %157 : vector<1x8x32xf32> to vector<8x32xf32>
      %c0_78 = arith.constant 0 : index
      %c0_79 = arith.constant 0 : index
      %159 = vector.load %arg19[%c0_78, %c0_79] : memref<8x32xf32, #tpu.memory_space<vmem>>, vector<8x32xf32>
      tpu.vector_store %arg19[%c0_78, %c0_79], %158 {strides = array<i32>} : memref<8x32xf32, #tpu.memory_space<vmem>>, vector<8x32xf32>,
    } else {
    }
    %c0 = arith.constant 0 : index
    %c0_1 = arith.constant 0 : index
    %3 = vector.load %arg19[%c0, %c0_1] : memref<8x32xf32, #tpu.memory_space<vmem>>, vector<8x32xf32>
    %4 = arith.truncf %3 : vector<8x32xf32> to vector<8x32xbf16>
    %c0_2 = arith.constant 0 : index
    %c0_3 = arith.constant 0 : index
    %c0_4 = arith.constant 0 : index
    %5 = vector.load %arg6[%c0_2, %c0_3, %c0_4] : memref<1x32x96xbf16, #tpu.memory_space<vmem>>, vector<1x32x96xbf16>
    %6 = vector.shape_cast %5 : vector<1x32x96xbf16> to vector<32x96xbf16>
    %cst = arith.constant dense<0.000000e+00> : vector<8x96xf32>
    %7 = tpu.matmul %4, %6, %cst {dimension_numbers = #tpu.dot_dimension_numbers<[1], [0], [0], [1], [0, 0, 1, 1], [], []>} : vector<8x32xbf16>, vector<32x96xbf16>, vector<8x96xf32> -> vector<8x96xf32>
    %c0_5 = arith.constant 0 : index
    %c0_6 = arith.constant 0 : index
    %c0_7 = arith.constant 0 : index
    %8 = vector.load %arg7[%c0_5, %c0_6, %c0_7] : memref<1x1x96xf32, #tpu.memory_space<vmem>>, vector<1x1x96xf32>
    %9 = vector.shape_cast %8 : vector<1x1x96xf32> to vector<1x96xf32>
    %10 = vector.broadcast %9 : vector<1x96xf32> to vector<8x96xf32>
    %11 = arith.addf %7, %10 : vector<8x96xf32>
    %12 = arith.truncf %11 : vector<8x96xf32> to vector<8x96xbf16>
    %cst_8 = arith.constant 0.000000e+00 : f32
    %13 = vector.broadcast %cst_8 : f32 to vector<8x32xf32>
    %14 = vector.extract_strided_slice %12 {offsets = [0, 0], sizes = [8, 16], strides = [1, 1]} : vector<8x96xbf16> to vector<8x16xbf16>
    %15 = vector.shape_cast %14 : vector<8x16xbf16> to vector<1x8x16xbf16>
    %16 = vector.extract_strided_slice %12 {offsets = [0, 32], sizes = [8, 16], strides = [1, 1]} : vector<8x96xbf16> to vector<8x16xbf16>
    %17 = vector.shape_cast %16 : vector<8x16xbf16> to vector<1x8x16xbf16>
    %18 = vector.extract_strided_slice %12 {offsets = [0, 64], sizes = [8, 16], strides = [1, 1]} : vector<8x96xbf16> to vector<8x16xbf16>
    %19 = vector.shape_cast %18 : vector<8x16xbf16> to vector<1x8x16xbf16>
    "tpu.trace_start"() <{level = 10 : i32, message = "bqa,bka->bqk"}> : () -> ()
    %cst_9 = arith.constant dense<0.000000e+00> : vector<1x8x8xf32>
    %20 = tpu.matmul %15, %17, %cst_9 {dimension_numbers = #tpu.dot_dimension_numbers<[2], [2], [1], [1], [0, 0, 0, 1, 1, 1], [0], [0]>} : vector<1x8x16xbf16>, vector<1x8x16xbf16>, vector<1x8x8xf32> -> vector<1x8x8xf32>
    "tpu.trace_stop"() : () -> ()
    %cst_10 = arith.constant 2.500000e-01 : f32
    %21 = vector.broadcast %cst_10 : f32 to vector<1x8x8xf32>
    %22 = arith.mulf %20, %21 : vector<1x8x8xf32>
    %cst_11 = arith.constant dense<0xFF800000> : vector<1x8xf32>
    %23 = vector.multi_reduction <maximumf>, %22, %cst_11 [2] : vector<1x8x8xf32> to vector<1x8xf32>
    %24 = vector.shape_cast %23 : vector<1x8xf32> to vector<1x8x1xf32>
    %25 = vector.broadcast %24 : vector<1x8x1xf32> to vector<1x8x8xf32>
    %26 = arith.subf %22, %25 : vector<1x8x8xf32>
    %27 = math.exp %26 : vector<1x8x8xf32>
    %cst_12 = arith.constant dense<0.000000e+00> : vector<1x8xf32>
    %28 = vector.multi_reduction <add>, %27, %cst_12 [2] : vector<1x8x8xf32> to vector<1x8xf32>
    %29 = vector.shape_cast %28 : vector<1x8xf32> to vector<1x8x1xf32>
    %30 = tpu.reciprocal %29 {approx = true} : vector<1x8x1xf32> -> vector<1x8x1xf32>
    %31 = vector.broadcast %30 : vector<1x8x1xf32> to vector<1x8x8xf32>
    %32 = arith.mulf %27, %31 : vector<1x8x8xf32>
    %33 = arith.truncf %32 : vector<1x8x8xf32> to vector<1x8x8xbf16>
    "tpu.trace_start"() <{level = 10 : i32, message = "bqk,bka->bqa"}> : () -> ()
    %cst_13 = arith.constant dense<0.000000e+00> : vector<1x8x16xf32>
    %34 = tpu.matmul %33, %19, %cst_13 {dimension_numbers = #tpu.dot_dimension_numbers<[2], [1], [1], [2], [0, 0, 0, 1, 1, 2], [0], [0]>} : vector<1x8x8xbf16>, vector<1x8x16xbf16>, vector<1x8x16xf32> -> vector<1x8x16xf32>
    "tpu.trace_stop"() : () -> ()
    %35 = vector.shape_cast %34 : vector<1x8x16xf32> to vector<8x16xf32>
    %36 = arith.truncf %35 : vector<8x16xf32> to vector<8x16xbf16>
    %c0_14 = arith.constant 0 : index
    %c0_15 = arith.constant 0 : index
    %c0_16 = arith.constant 0 : index
    %37 = vector.load %arg8[%c0_14, %c0_15, %c0_16] : memref<1x32x32xbf16, #tpu.memory_space<vmem>>, vector<1x16x32xbf16>
    %38 = vector.shape_cast %37 : vector<1x16x32xbf16> to vector<16x32xbf16>
    %cst_17 = arith.constant dense<0.000000e+00> : vector<8x32xf32>
    %39 = tpu.matmul %36, %38, %cst_17 {dimension_numbers = #tpu.dot_dimension_numbers<[1], [0], [0], [1], [0, 0, 1, 1], [], []>} : vector<8x16xbf16>, vector<16x32xbf16>, vector<8x32xf32> -> vector<8x32xf32>
    %40 = arith.addf %13, %39 : vector<8x32xf32>
    %41 = vector.extract_strided_slice %12 {offsets = [0, 16], sizes = [8, 16], strides = [1, 1]} : vector<8x96xbf16> to vector<8x16xbf16>
    %42 = vector.shape_cast %41 : vector<8x16xbf16> to vector<1x8x16xbf16>
    %43 = vector.extract_strided_slice %12 {offsets = [0, 48], sizes = [8, 16], strides = [1, 1]} : vector<8x96xbf16> to vector<8x16xbf16>
    %44 = vector.shape_cast %43 : vector<8x16xbf16> to vector<1x8x16xbf16>
    %45 = vector.extract_strided_slice %12 {offsets = [0, 80], sizes = [8, 16], strides = [1, 1]} : vector<8x96xbf16> to vector<8x16xbf16>
    %46 = vector.shape_cast %45 : vector<8x16xbf16> to vector<1x8x16xbf16>
    "tpu.trace_start"() <{level = 10 : i32, message = "bqa,bka->bqk"}> : () -> ()
    %cst_18 = arith.constant dense<0.000000e+00> : vector<1x8x8xf32>
    %47 = tpu.matmul %42, %44, %cst_18 {dimension_numbers = #tpu.dot_dimension_numbers<[2], [2], [1], [1], [0, 0, 0, 1, 1, 1], [0], [0]>} : vector<1x8x16xbf16>, vector<1x8x16xbf16>, vector<1x8x8xf32> -> vector<1x8x8xf32>
    "tpu.trace_stop"() : () -> ()
    %cst_19 = arith.constant 2.500000e-01 : f32
    %48 = vector.broadcast %cst_19 : f32 to vector<1x8x8xf32>
    %49 = arith.mulf %47, %48 : vector<1x8x8xf32>
    %cst_20 = arith.constant dense<0xFF800000> : vector<1x8xf32>
    %50 = vector.multi_reduction <maximumf>, %49, %cst_20 [2] : vector<1x8x8xf32> to vector<1x8xf32>
    %51 = vector.shape_cast %50 : vector<1x8xf32> to vector<1x8x1xf32>
    %52 = vector.broadcast %51 : vector<1x8x1xf32> to vector<1x8x8xf32>
    %53 = arith.subf %49, %52 : vector<1x8x8xf32>
    %54 = math.exp %53 : vector<1x8x8xf32>
    %cst_21 = arith.constant dense<0.000000e+00> : vector<1x8xf32>
    %55 = vector.multi_reduction <add>, %54, %cst_21 [2] : vector<1x8x8xf32> to vector<1x8xf32>
    %56 = vector.shape_cast %55 : vector<1x8xf32> to vector<1x8x1xf32>
    %57 = tpu.reciprocal %56 {approx = true} : vector<1x8x1xf32> -> vector<1x8x1xf32>
    %58 = vector.broadcast %57 : vector<1x8x1xf32> to vector<1x8x8xf32>
    %59 = arith.mulf %54, %58 : vector<1x8x8xf32>
    %60 = arith.truncf %59 : vector<1x8x8xf32> to vector<1x8x8xbf16>
    "tpu.trace_start"() <{level = 10 : i32, message = "bqk,bka->bqa"}> : () -> ()
    %cst_22 = arith.constant dense<0.000000e+00> : vector<1x8x16xf32>
    %61 = tpu.matmul %60, %46, %cst_22 {dimension_numbers = #tpu.dot_dimension_numbers<[2], [1], [1], [2], [0, 0, 0, 1, 1, 2], [0], [0]>} : vector<1x8x8xbf16>, vector<1x8x16xbf16>, vector<1x8x16xf32> -> vector<1x8x16xf32>
    "tpu.trace_stop"() : () -> ()
    %62 = vector.shape_cast %61 : vector<1x8x16xf32> to vector<8x16xf32>
    %63 = arith.truncf %62 : vector<8x16xf32> to vector<8x16xbf16>
    %c0_23 = arith.constant 0 : index
    %c16 = arith.constant 16 : index
    %c0_24 = arith.constant 0 : index
    %64 = vector.load %arg8[%c0_23, %c16, %c0_24] : memref<1x32x32xbf16, #tpu.memory_space<vmem>>, vector<1x16x32xbf16>
    %65 = vector.shape_cast %64 : vector<1x16x32xbf16> to vector<16x32xbf16>
    %cst_25 = arith.constant dense<0.000000e+00> : vector<8x32xf32>
    %66 = tpu.matmul %63, %65, %cst_25 {dimension_numbers = #tpu.dot_dimension_numbers<[1], [0], [0], [1], [0, 0, 1, 1], [], []>} : vector<8x16xbf16>, vector<16x32xbf16>, vector<8x32xf32> -> vector<8x32xf32>
    %67 = arith.addf %40, %66 : vector<8x32xf32>
    %c0_26 = arith.constant 0 : index
    %c0_27 = arith.constant 0 : index
    %c0_28 = arith.constant 0 : index
    %68 = vector.load %arg9[%c0_26, %c0_27, %c0_28] : memref<1x1x32xf32, #tpu.memory_space<vmem>>, vector<1x1x32xf32>
    %69 = vector.shape_cast %68 : vector<1x1x32xf32> to vector<1x32xf32>
    %70 = vector.broadcast %69 : vector<1x32xf32> to vector<8x32xf32>
    %71 = arith.addf %67, %70 : vector<8x32xf32>
    %72 = arith.addf %3, %71 : vector<8x32xf32>
    %c0_29 = arith.constant 0 : index
    %c0_30 = arith.constant 0 : index
    %c0_31 = arith.constant 0 : index
    %73 = vector.load %arg10[%c0_29, %c0_30, %c0_31] : memref<1x1x32xf32, #tpu.memory_space<vmem>>, vector<1x1x32xf32>
    %74 = vector.shape_cast %73 : vector<1x1x32xf32> to vector<1x32xf32>
    %c0_32 = arith.constant 0 : index
    %c0_33 = arith.constant 0 : index
    %c0_34 = arith.constant 0 : index
    %75 = vector.load %arg11[%c0_32, %c0_33, %c0_34] : memref<1x1x32xf32, #tpu.memory_space<vmem>>, vector<1x1x32xf32>
    %76 = vector.shape_cast %75 : vector<1x1x32xf32> to vector<1x32xf32>
    %cst_35 = arith.constant dense<0.000000e+00> : vector<8xf32>
    %77 = vector.multi_reduction <add>, %72, %cst_35 [1] : vector<8x32xf32> to vector<8xf32>
    %78 = vector.shape_cast %77 : vector<8xf32> to vector<8x1xf32>
    %cst_36 = arith.constant 3.200000e+01 : f32
    %79 = vector.broadcast %cst_36 : f32 to vector<8x1xf32>
    %80 = arith.divf %78, %79 : vector<8x1xf32>
    %81 = vector.broadcast %80 : vector<8x1xf32> to vector<8x32xf32>
    %82 = arith.subf %72, %81 : vector<8x32xf32>
    %83 = arith.mulf %82, %82 : vector<8x32xf32>
    %cst_37 = arith.constant dense<0.000000e+00> : vector<8xf32>
    %84 = vector.multi_reduction <add>, %83, %cst_37 [1] : vector<8x32xf32> to vector<8xf32>
    %85 = vector.shape_cast %84 : vector<8xf32> to vector<8x1xf32>
    %cst_38 = arith.constant 3.200000e+01 : f32
    %86 = vector.broadcast %cst_38 : f32 to vector<8x1xf32>
    %87 = arith.divf %85, %86 : vector<8x1xf32>
    %88 = vector.broadcast %80 : vector<8x1xf32> to vector<8x32xf32>
    %89 = arith.subf %72, %88 : vector<8x32xf32>
    %cst_39 = arith.constant 9.99999974E-6 : f32
    %90 = vector.broadcast %cst_39 : f32 to vector<8x1xf32>
    %91 = arith.addf %87, %90 : vector<8x1xf32>
    %92 = math.rsqrt %91 : vector<8x1xf32>
    %93 = vector.broadcast %92 : vector<8x1xf32> to vector<8x32xf32>
    %94 = arith.mulf %89, %93 : vector<8x32xf32>
    %95 = vector.broadcast %74 : vector<1x32xf32> to vector<8x32xf32>
    %96 = arith.mulf %94, %95 : vector<8x32xf32>
    %97 = vector.broadcast %76 : vector<1x32xf32> to vector<8x32xf32>
    %98 = arith.addf %96, %97 : vector<8x32xf32>
    %99 = arith.truncf %98 : vector<8x32xf32> to vector<8x32xbf16>
    %c0_40 = arith.constant 0 : index
    %c0_41 = arith.constant 0 : index
    %c0_42 = arith.constant 0 : index
    %100 = vector.load %arg12[%c0_40, %c0_41, %c0_42] : memref<1x32x64xbf16, #tpu.memory_space<vmem>>, vector<1x32x64xbf16>
    %101 = vector.shape_cast %100 : vector<1x32x64xbf16> to vector<32x64xbf16>
    %cst_43 = arith.constant dense<0.000000e+00> : vector<8x64xf32>
    %102 = tpu.matmul %99, %101, %cst_43 {dimension_numbers = #tpu.dot_dimension_numbers<[1], [0], [0], [1], [0, 0, 1, 1], [], []>} : vector<8x32xbf16>, vector<32x64xbf16>, vector<8x64xf32> -> vector<8x64xf32>
    %c0_44 = arith.constant 0 : index
    %c0_45 = arith.constant 0 : index
    %c0_46 = arith.constant 0 : index
    %103 = vector.load %arg13[%c0_44, %c0_45, %c0_46] : memref<1x1x64xf32, #tpu.memory_space<vmem>>, vector<1x1x64xf32>
    %104 = vector.shape_cast %103 : vector<1x1x64xf32> to vector<1x64xf32>
    %105 = vector.broadcast %104 : vector<1x64xf32> to vector<8x64xf32>
    %106 = arith.addf %102, %105 : vector<8x64xf32>
    %cst_47 = arith.constant 0.000000e+00 : f32
    %107 = vector.broadcast %cst_47 : f32 to vector<8x64xf32>
    %108 = arith.maximumf %106, %107 : vector<8x64xf32>
    %109 = arith.truncf %108 : vector<8x64xf32> to vector<8x64xbf16>
    %c0_48 = arith.constant 0 : index
    %c0_49 = arith.constant 0 : index
    %c0_50 = arith.constant 0 : index
    %110 = vector.load %arg14[%c0_48, %c0_49, %c0_50] : memref<1x64x32xbf16, #tpu.memory_space<vmem>>, vector<1x64x32xbf16>
    %111 = vector.shape_cast %110 : vector<1x64x32xbf16> to vector<64x32xbf16>
    %cst_51 = arith.constant dense<0.000000e+00> : vector<8x32xf32>
    %112 = tpu.matmul %109, %111, %cst_51 {dimension_numbers = #tpu.dot_dimension_numbers<[1], [0], [0], [1], [0, 0, 1, 1], [], []>} : vector<8x64xbf16>, vector<64x32xbf16>, vector<8x32xf32> -> vector<8x32xf32>
    %c0_52 = arith.constant 0 : index
    %c0_53 = arith.constant 0 : index
    %c0_54 = arith.constant 0 : index
    %113 = vector.load %arg15[%c0_52, %c0_53, %c0_54] : memref<1x1x32xf32, #tpu.memory_space<vmem>>, vector<1x1x32xf32>
    %114 = vector.shape_cast %113 : vector<1x1x32xf32> to vector<1x32xf32>
    %115 = vector.broadcast %114 : vector<1x32xf32> to vector<8x32xf32>
    %116 = arith.addf %112, %115 : vector<8x32xf32>
    %117 = arith.addf %98, %116 : vector<8x32xf32>
    %c0_55 = arith.constant 0 : index
    %c0_56 = arith.constant 0 : index
    %c0_57 = arith.constant 0 : index
    %118 = vector.load %arg16[%c0_55, %c0_56, %c0_57] : memref<1x1x32xf32, #tpu.memory_space<vmem>>, vector<1x1x32xf32>
    %119 = vector.shape_cast %118 : vector<1x1x32xf32> to vector<1x32xf32>
    %c0_58 = arith.constant 0 : index
    %c0_59 = arith.constant 0 : index
    %c0_60 = arith.constant 0 : index
    %120 = vector.load %arg17[%c0_58, %c0_59, %c0_60] : memref<1x1x32xf32, #tpu.memory_space<vmem>>, vector<1x1x32xf32>
    %121 = vector.shape_cast %120 : vector<1x1x32xf32> to vector<1x32xf32>
    %cst_61 = arith.constant dense<0.000000e+00> : vector<8xf32>
    %122 = vector.multi_reduction <add>, %117, %cst_61 [1] : vector<8x32xf32> to vector<8xf32>
    %123 = vector.shape_cast %122 : vector<8xf32> to vector<8x1xf32>
    %cst_62 = arith.constant 3.200000e+01 : f32
    %124 = vector.broadcast %cst_62 : f32 to vector<8x1xf32>
    %125 = arith.divf %123, %124 : vector<8x1xf32>
    %126 = vector.broadcast %125 : vector<8x1xf32> to vector<8x32xf32>
    %127 = arith.subf %117, %126 : vector<8x32xf32>
    %128 = arith.mulf %127, %127 : vector<8x32xf32>
    %cst_63 = arith.constant dense<0.000000e+00> : vector<8xf32>
    %129 = vector.multi_reduction <add>, %128, %cst_63 [1] : vector<8x32xf32> to vector<8xf32>
    %130 = vector.shape_cast %129 : vector<8xf32> to vector<8x1xf32>
    %cst_64 = arith.constant 3.200000e+01 : f32
    %131 = vector.broadcast %cst_64 : f32 to vector<8x1xf32>
    %132 = arith.divf %130, %131 : vector<8x1xf32>
    %133 = vector.broadcast %125 : vector<8x1xf32> to vector<8x32xf32>
    %134 = arith.subf %117, %133 : vector<8x32xf32>
    %cst_65 = arith.constant 9.99999974E-6 : f32
    %135 = vector.broadcast %cst_65 : f32 to vector<8x1xf32>
    %136 = arith.addf %132, %135 : vector<8x1xf32>
    %137 = math.rsqrt %136 : vector<8x1xf32>
    %138 = vector.broadcast %137 : vector<8x1xf32> to vector<8x32xf32>
    %139 = arith.mulf %134, %138 : vector<8x32xf32>
    %140 = vector.broadcast %119 : vector<1x32xf32> to vector<8x32xf32>
    %141 = arith.mulf %139, %140 : vector<8x32xf32>
    %142 = vector.broadcast %121 : vector<1x32xf32> to vector<8x32xf32>
    %143 = arith.addf %141, %142 : vector<8x32xf32>
    %c0_66 = arith.constant 0 : index
    %c0_67 = arith.constant 0 : index
    %144 = vector.load %arg19[%c0_66, %c0_67] : memref<8x32xf32, #tpu.memory_space<vmem>>, vector<8x32xf32>
    tpu.vector_store %arg19[%c0_66, %c0_67], %143 {strides = array<i32>} : memref<8x32xf32, #tpu.memory_space<vmem>>, vector<8x32xf32>,
    %c1_i32 = arith.constant 1 : i32
    %145 = arith.cmpi eq, %arg1, %c1_i32 : i32
    %146 = arith.extui %145 : i1 to i32
    %c0_i32_68 = arith.constant 0 : i32
    %147 = arith.cmpi ne, %146, %c0_i32_68 : i32
    scf.if %147 {
      %c0_69 = arith.constant 0 : index
      %c0_70 = arith.constant 0 : index
      %148 = vector.load %arg18[%c0_69, %c0_70] : memref<8x32xf32, #tpu.memory_space<vmem>>, vector<8x32xf32>
      tpu.vector_store %arg18[%c0_69, %c0_70], %143 {strides = array<i32>} : memref<8x32xf32, #tpu.memory_space<vmem>>, vector<8x32xf32>,
    } else {
    }
    return
  }
  func.func @transform_0(%arg0: i32, %arg1: i32) -> (i32, i32) {
    %c0_i32 = arith.constant 0 : i32
    %c0_i32_0 = arith.constant 0 : i32
    return %arg0, %c0_i32 : i32, i32
  }
  func.func @transform_1(%arg0: i32, %arg1: i32) -> (i32, i32) {
    %c0_i32 = arith.constant 0 : i32
    %c0_i32_0 = arith.constant 0 : i32
    %c0_i32_1 = arith.constant 0 : i32
    return %c0_i32, %c0_i32_0 : i32, i32
  }
  func.func @transform_2(%arg0: i32, %arg1: i32) -> (i32, i32) {
    %c0_i32 = arith.constant 0 : i32
    %c0_i32_0 = arith.constant 0 : i32
    %c0_i32_1 = arith.constant 0 : i32
    return %c0_i32, %c0_i32_0 : i32, i32
  }
  func.func @transform_3(%arg0: i32, %arg1: i32) -> (i32, i32) {
    %c0_i32 = arith.constant 0 : i32
    %c0_i32_0 = arith.constant 0 : i32
    %c0_i32_1 = arith.constant 0 : i32
    return %c0_i32, %c0_i32_0 : i32, i32
  }
  func.func @transform_4(%arg0: i32, %arg1: i32) -> (i32, i32, i32) {
    %c0_i32 = arith.constant 0 : i32
    %c0_i32_0 = arith.constant 0 : i32
    %c0_i32_1 = arith.constant 0 : i32
    return %arg1, %c0_i32, %c0_i32_0 : i32, i32, i32
  }
  func.func @transform_5(%arg0: i32, %arg1: i32) -> (i32, i32, i32) {
    %c0_i32 = arith.constant 0 : i32
    %c0_i32_0 = arith.constant 0 : i32
    %c0_i32_1 = arith.constant 0 : i32
    return %arg1, %c0_i32, %c0_i32_0 : i32, i32, i32
  }
  func.func @transform_6(%arg0: i32, %arg1: i32) -> (i32, i32, i32) {
    %c0_i32 = arith.constant 0 : i32
    %c0_i32_0 = arith.constant 0 : i32
    %c0_i32_1 = arith.constant 0 : i32
    return %arg1, %c0_i32, %c0_i32_0 : i32, i32, i32
  }
  func.func @transform_7(%arg0: i32, %arg1: i32) -> (i32, i32, i32) {
    %c0_i32 = arith.constant 0 : i32
    %c0_i32_0 = arith.constant 0 : i32
    %c0_i32_1 = arith.constant 0 : i32
    return %arg1, %c0_i32, %c0_i32_0 : i32, i32, i32
  }
  func.func @transform_8(%arg0: i32, %arg1: i32) -> (i32, i32, i32) {
    %c0_i32 = arith.constant 0 : i32
    %c0_i32_0 = arith.constant 0 : i32
    %c0_i32_1 = arith.constant 0 : i32
    return %arg1, %c0_i32, %c0_i32_0 : i32, i32, i32
  }
  func.func @transform_9(%arg0: i32, %arg1: i32) -> (i32, i32, i32) {
    %c0_i32 = arith.constant 0 : i32
    %c0_i32_0 = arith.constant 0 : i32
    %c0_i32_1 = arith.constant 0 : i32
    return %arg1, %c0_i32, %c0_i32_0 : i32, i32, i32
  }
  func.func @transform_10(%arg0: i32, %arg1: i32) -> (i32, i32, i32) {
    %c0_i32 = arith.constant 0 : i32
    %c0_i32_0 = arith.constant 0 : i32
    %c0_i32_1 = arith.constant 0 : i32
    return %arg1, %c0_i32, %c0_i32_0 : i32, i32, i32
  }
  func.func @transform_11(%arg0: i32, %arg1: i32) -> (i32, i32, i32) {
    %c0_i32 = arith.constant 0 : i32
    %c0_i32_0 = arith.constant 0 : i32
    %c0_i32_1 = arith.constant 0 : i32
    return %arg1, %c0_i32, %c0_i32_0 : i32, i32, i32
  }
  func.func @transform_12(%arg0: i32, %arg1: i32) -> (i32, i32, i32) {
    %c0_i32 = arith.constant 0 : i32
    %c0_i32_0 = arith.constant 0 : i32
    %c0_i32_1 = arith.constant 0 : i32
    return %arg1, %c0_i32, %c0_i32_0 : i32, i32, i32
  }
  func.func @transform_13(%arg0: i32, %arg1: i32) -> (i32, i32, i32) {
    %c0_i32 = arith.constant 0 : i32
    %c0_i32_0 = arith.constant 0 : i32
    %c0_i32_1 = arith.constant 0 : i32
    return %arg1, %c0_i32, %c0_i32_0 : i32, i32, i32
  }
  func.func @transform_14(%arg0: i32, %arg1: i32) -> (i32, i32, i32) {
    %c0_i32 = arith.constant 0 : i32
    %c0_i32_0 = arith.constant 0 : i32
    %c0_i32_1 = arith.constant 0 : i32
    return %arg1, %c0_i32, %c0_i32_0 : i32, i32, i32
  }
  func.func @transform_15(%arg0: i32, %arg1: i32) -> (i32, i32, i32) {
    %c0_i32 = arith.constant 0 : i32
    %c0_i32_0 = arith.constant 0 : i32
    %c0_i32_1 = arith.constant 0 : i32
    return %arg1, %c0_i32, %c0_i32_0 : i32, i32, i32
  }
  func.func @transform_16(%arg0: i32, %arg1: i32) -> (i32, i32) {
    %c0_i32 = arith.constant 0 : i32
    %c0_i32_0 = arith.constant 0 : i32
    return %arg0, %c0_i32 : i32, i32
  }
}

</mosaic_0001>

<bundles_post_ra>
// kernel: tpu_custom_call.1
= control target key start
LH: loop header
LB: loop body
LE: loop exit
PB: predicated region body
PF: predicated region fallthrough
CT: control target
= control target key end

     0   :  { %s2449_s0 = inlined_call_operand.vmem [shape: bf16[16,4], index: 0, kind: input, shape index: {}]   ;;  %s2450_s1 = inlined_call_operand.vmem [shape: bf16[4,32], index: 1, kind: input, shape index: {}]   ;;  %s2451_s2 = inlined_call_operand.hbm [shape: f32[1,32], index: 2, kind: input, shape index: {}]   ;;  %s2452_s3 = inlined_call_operand.vmem [shape: f32[8,32], index: 3, kind: input, shape index: {}]   ;;  %s2453_s4 = inlined_call_operand.vmem [shape: bf16[2,32,96], index: 4, kind: input, shape index: {}]   ;;  %s2454_s5 = inlined_call_operand.vmem [shape: f32[2,1,96], index: 5, kind: input, shape index: {}]   ;;  %s2455_s6 = inlined_call_operand.vmem [shape: bf16[2,32,32], index: 6, kind: input, shape index: {}]   ;;  %s2456_s7 = inlined_call_operand.vmem [shape: f32[2,1,32], index: 7, kind: input, shape index: {}]   ;;  %s2457_s8 = inlined_call_operand.vmem [shape: f32[2,1,32], index: 8, kind: input, shape index: {}]   ;;  %s2458_s9 = inlined_call_operand.vmem [shape: f32[2,1,32], index: 9, kind: input, shape index: {}]   ;;  %s2459_s10 = inlined_call_operand.vmem [shape: bf16[2,32,64], index: 10, kind: input, shape index: {}]   ;;  %s2460_s11 = inlined_call_operand.vmem [shape: f32[2,1,64], index: 11, kind: input, shape index: {}]   ;;  %s2461_s12 = inlined_call_operand.vmem [shape: bf16[2,64,32], index: 12, kind: input, shape index: {}]   ;;  %s2462_s13 = inlined_call_operand.vmem [shape: f32[2,1,32], index: 13, kind: input, shape index: {}]   ;;  %s2463_s14 = inlined_call_operand.vmem [shape: f32[2,1,32], index: 14, kind: input, shape index: {}]   ;;  %s2464_s15 = inlined_call_operand.vmem [shape: f32[2,1,32], index: 15, kind: input, shape index: {}]   ;;  %s2465_s16 = inlined_call_operand.hbm [shape: f32[16,32], index: 16, kind: output, shape index: {}]  }
   0x1   :  { %2482 = sst [smem:[#allocation23_spill]] %s2449_s0 }
   0x2   :  { %2483 = sst [smem:[#allocation24_spill]] %s2450_s1 }
   0x3   :  { %2484 = sst [smem:[#allocation25_spill]] %s2451_s2 }
   0x4   :  { %2485 = sst [smem:[#allocation26_spill]] %s2452_s3 }
   0x5   :  { %2486 = sst [smem:[#allocation27_spill]] %s2453_s4 }
   0x6   :  { %2487 = sst [smem:[#allocation28_spill]] %s2455_s6 }
   0x7   :  { %2488 = sst [smem:[#allocation29_spill]] %s2465_s16 }
   0x8   :  { %21 = vsyncpa [#allocation4], 0 }
   0x9   :  { %22 = vsyncpa [#allocation5], 0 }
   0xa   :  { %24 = vsyncpa [#allocation5 + $0x1], 0  ;;  %s2125_s21 = smov 0   ;;  %s2127_s22 = smov 0  }
   0xb   :  { %s2129_s23 = smov 0   ;;  %s2131_s24 = smov 0  }
   0xc   :  { %s2133_s25 = smov 0   ;;  %s2135_s26 = smov 0  }
   0xd   :  { %s2137_s27 = smov 0   ;;  %s2139_s28 = smov 0  }
   0xe LB: > { %2489 = sst [smem:[#allocation9_spill]] %s1999_s21  ;;  %s1641_s29 = sadd.s32 4294967295, %s2027_s28   ;;  %s2027_s28 = sphi %s2139_s28, %s30_s28   ;;  %s2023_s27 = sphi %s2137_s27, %s2536_s27   ;;  %s2019_s26 = sphi %s2135_s26, %s2535_s26   ;;  %s2015_s25 = sphi %s2133_s25, %s2534_s25   ;;  %s2011_s24 = sphi %s2131_s24, %s2533_s24   ;;  %s2007_s23 = sphi %s2129_s23, %s2532_s23   ;;  %s2003_s22 = sphi %s2127_s22, %s2531_s22   ;;  %s1999_s21 = sphi %s2125_s21, %s2530_s21  }
   0xf   : > { %2490 = sst [smem:[#allocation10_spill]] %s2003_s22  ;;  %s1642_s30 = sadd.s32 4294967294, %s2027_s28  }
  0x10   : > { %2491 = sst [smem:[#allocation11_spill]] %s2007_s23  ;;  %s39_s0 = sadd.s32 1, %s2019_s26 }
  0x11   : > { %2492 = sst [smem:[#allocation12_spill]] %s2011_s24  ;;  %s42_s17 = sadd.s32 1, %s2023_s27 }
  0x12   : > { %2493 = sst [smem:[#allocation13_spill]] %s2015_s25  ;;  %p40_p0 = scmp.ge.s32.totalorder %s39_s0, 2 }
  0x13   : > { %2494 = sst [smem:[#allocation14_spill]] %s2019_s26  ;;  %s450_s18 = sadd.s32 1, %s2007_s23 }
  0x14   : > { %2495 = sst [smem:[#allocation15_spill]] %s2023_s27  ;;  %p460_p1 = scmp.ne.s32.totalorder %s2007_s23, %s2003_s22 }
  0x15   : > { %2496 = sst [smem:[#allocation16_spill]] %s2027_s28  ;;  %p461_p2 = scmp.eq.s32.totalorder %s1641_s29, 3 }
  0x16   : > { %s2538_s0 = smov (%p40_p0, %s39_s0), 0  ;;  %s2540_s17 = smov (!%p40_p0, %s42_s17), %s2023_s27 }
  0x17   : > { %2497 = sst [smem:[#allocation17_spill]] %s2538_s0  ;;  %p2175_p3 = por %p461_p2, %p460_p1 }
  0x18   : > { %p466_p4 = scmp.ne.s32.totalorder %s2003_s22, %s1999_s21  ;;  %p44_p5 = scmp.ge.s32.totalorder %s2540_s17, 2 }
  0x19   : > { %s2498_s19 = scalar_select %p2175_p3, 1, 0 }
  0x1a   : > { %p467_p6 = scmp.eq.s32.totalorder %s1642_s30, 3  ;;  %p1643_p7 = scmp.ge.s32.totalorder %s2027_s28, 1 }
  0x1b   : > { %2499 = sst [smem:[#allocation18_spill]] %s2498_s19  ;;  %p474_p8 = scmp.lt.s32.totalorder %s2027_s28, 5 }
  0x1c   : > { %s2542_s17 = smov (%p44_p5, %s2540_s17), 0  ;;  %p2185_p9 = por %p467_p6, %p466_p4 }
  0x1d   : > { %2500 = sst [smem:[#allocation19_spill]] %s2542_s17  ;;  %p2189_p10 = pnand %p1643_p7, %p474_p8 }
  0x1e   : > { %s2501_s20 = scalar_select %p2185_p9, 1, 0 }
  0x1f   : > { %s447_s0 = ssub.s32 %s2023_s27, %s2542_s17  ;;  %p1798_p12 = pneg %p2189_p10 }
  0x20   : > { %2502 = sst [smem:[#allocation20_spill]] %s2501_s20  ;;  %p448_p11 = scmp.eq.s32.totalorder %s447_s0, 0 }
  0x21   : > { %p2197_p13 = scmp.eq.s32.totalorder %s1641_s29, 0  ;;  %s2029_s28 = smov [#allocation3]  }
  0x22   : > { %s2202_s21 = scalar_select %p448_p11, %s2007_s23, %s450_s18  }
  0x23   : > { %s490_s16 = sshll.u32 %s2029_s28, 4  ;;  %p1799_p0 = pnand %p2197_p13, %p1798_p12  ;;  %s491_s16 = int_to_ptr.vmem [resolvable:$true] %s490_s16 }
  0x24   : > { %2505 = sst [smem:[#allocation21_spill]] %s2202_s21  ;;  %s1916_s20 = scalar_lea.vmem %s491_s16, 16 }
  0x25   : > { %p1907_p1 = pneg %p1799_p0  ;;  %p1917_p2 = scmp.ne.s32.totalorder %s491_s16, %s1916_s20 }
  0x26   : > { %s1923_s0 = scalar_lea.vmem %s491_s16, 32  ;;  %p1924_p6 = scmp.lt.s32.totalorder %s491_s16, %s491_s16 }
  0x27   : > { %p1919_p4 = pnand %p1917_p2, %p1907_p1  ;;  %p1925_p7 = scmp.lt.s32.totalorder %s1923_s0, %s1916_s20 }
  0x29   : > { %p1920_p5 = pneg %p1919_p4  ;;  %p1926_p8 = por %p1925_p7, %p1924_p6 }
  0x2b   : > { %p1927_p9 = pnand %p1926_p8, %p1920_p5 }
  0x2d   : > { %1930 = shalt.err (!%p1927_p9)
}
  0x2e   : > { %s2506_s2 = sld [smem:[#allocation25_spill]] }
  0x30   : > { %593 = sbr.rel (%p2189_p10) target bundleno = 2565 (0xa05), region = 84 }
  0x34   : > { %1801 = dma.hbm_to_vmem [thread:$0]  (!%p1799_p0), %s2506_s2, 16, %s491_s16, [#allocation4]  }
  0x35   : > { %1990 = dma.done.wait (%p2197_p13), [#allocation4], 16  }
  0x36   : > { %1992 = vsyncadd (%p2197_p13), [#allocation4], 4294967280  ;;  %s2473_s28 = sand.u32 1, %s2003_s22   ;;  %p686_p9 = scmp.lt.s32.totalorder %s2015_s25, 1 }
  0x37   : > { %s2219_s17 = sshll.u32 %s2473_s28, 3  ;;  %p690_p11 = scmp.lt.s32.totalorder %s2011_s24, 1 }
  0x38   : > { %s687_s16 = scalar_select %p686_p9, %s2015_s25, 1 }
  0x39   : > { %s2224_s26 = scalar_select %p690_p11, %s2011_s24, 1 }
  0x3a   : > { %s1649_s18 = sshll.u32 %s687_s16, 2  ;;  %s2507_s0 = sld [smem:[#allocation23_spill]] }
  0x3b   : > { %s1693_s28 = sshll.u32 %s2224_s26, 4  ;;  %s2508_s4 = sld [smem:[#allocation27_spill]] }
  0x3c   : > { %s2510_s6 = sld [smem:[#allocation28_spill]]  ;;  %s2259_s19 = scalar_lea.vmem %s2459_s10, %s1693_s28 }
  0x3d   : > { %s727_s20 = scalar_lea.vmem %s2462_s13, %s2224_s26  ;;  %s685_s3 = scalar_lea.vmem [#allocation6], %s2219_s17 }
  0x3e   : > { %s2511_s25 = sld [smem:[#allocation12_spill]] }
  0x40   : > { %s689_s29 = scalar_lea.vmem %s2507_s0, %s1649_s18 }
  0x41   : > { %s2233_s21 = scalar_lea.vmem %s2508_s4, %s1693_s28  ;;  %s733_s4 = scalar_lea.vmem %s2464_s15, %s2224_s26 }
  0x42   : > { %2509 = sst [smem:[#allocation22_spill]] %s2233_s21  ;;  %s2242_s1 = scalar_lea.vmem %s2510_s6, %s1693_s28 }
  0x43   : > { %s1696_s6 = sshll.u32 %s2224_s26, 5  ;;  %s730_s21 = scalar_lea.vmem %s2463_s14, %s2224_s26 }
  0x44   : > { %s2273_s0 = scalar_lea.vmem %s2461_s12, %s1696_s6  ;;  %p1658_p10 = scmp.ne.s32.totalorder %s2511_s25, 0 }
  0x45   : > { %s2512_s16 = sld [smem:[#allocation24_spill]] (!%p1658_p10) }
  0x46   : > { %738 = sbr.rel (%p1658_p10) target bundleno = 279 (0x117), region = 92  ;;  %s2513_s30 = sld [smem:[#allocation26_spill]] (!%p1658_p10) }
  0x4b   : > { %v740_v0 = vld [vmem:[%s2512_s16] sm:$0x3]  ;;  %vm752_vm0 = vcmask 1041408   ;;  %v2030_v1 = vmov 0.0   ;;  %vm2031_vm1 = vmmov 0   ;;  %vm748_vm2 = vcmask 31744  }
  0x4c   : > { %1722 = vmatprep.subr.bf16.mxu0 %v2030_v1  ;;  %v754_v2 = vsel %vm752_vm0, %v740_v0, 0  ;;  %1724 = vmatprep.mubr.msk.bf16.mxu0 %vm2031_vm1, %v2030_v1  ;;  %v739_v3 = vld [vmem:[%s689_s29] sm:$0xf]  ;;  %v1659_v4 = vld [vmem:[#allocation3] ss:$0 sm:$0xff]  ;;  %vm798_vm3 = vcmask 261120  }
  0x4d   : > { %1723 = vmatpush3.bf16.msra.mxu0 %v754_v2  ;;  %v796_v6 = vld [vmem:[%s2513_s30] sm:$0xff] }
  0x50   : > { %1725 = vmatmul.mubr.msk.bf16.vlgmr.msra.gmra.mxu0 %vm748_vm2, %v739_v3 }
 0x110   : > { %v790_v5 = vpop.f32.mrf.mxu0 }
 0x111   : > { %v791_v7 = vadd.f32 %v1659_v4, %v790_v5 }
 0x112   : > { %v1726_v8 = vpop.f32.mrf.mxu0 }
 0x113   : > { %v797_v9 = vadd.f32 %v796_v6, %v791_v7 }
 0x114   : > { %v793_v10 = vpop.f32.mrf.mxu0 }
 0x115   : > { %799 = vst.msk [vmem:[#allocation2] sm:$0xff] %vm798_vm3, %v797_v9 }
 0x116   : > { %v1727_v11 = vpop.f32.mrf.mxu0 }
 0x117 PF: > { %s2514_s22 = sld [smem:[#allocation22_spill]]  ;;  %v2032_v13 = vmov 0.0   ;;  %vm2033_vm4 = vmmov 0   ;;  %vm825_vm5 = vcmask 261120   ;;  %s2515_s27 = scalar_lea.vmem %s2454_s5, %s2224_s26  ;;  %vm873_vm6 = vcmask 130048   ;;  %v1885_v63 = vld [vmem:[%s2242_s1] sm:$0xff]  }
 0x118   : > { %1728 = vmatprep.subr.bf16.mxu1 %v2032_v13  ;;  %1742 = vmatprep.subr.bf16.mxu0 %v2032_v13  ;;  %v1661_v17 = vld [vmem:[%s2515_s27] ss:$0 sm:$0xff]  ;;  %s2034_s28 = smov 112   ;;  %s2035_s23 = smov 96   ;;  %vm921_vm7 = vcmask 64512   ;;  %vm939_vm8 = vcmask 1043456  }
 0x119   : > { %1732 = vmatprep.mubr.msk.bf16.mxu1 %vm2033_vm4, %v2032_v13  ;;  %1744 = vmatprep.mubr.msk.bf16.mxu0 %vm2033_vm4, %v2032_v13  ;;  %s2036_s25 = smov 80   ;;  %s2037_s24 = smov 64   ;;  %v1886_v0 = vld [vmem:[%s2242_s1 + $0x8] sm:$0xff]   ;;  %vm1345_vm9 = vcmask 523264  }
 0x11a   : > { %s2038_s16 = smov 48   ;;  %s2516_s18 = scalar_lea.vmem %s2456_s7, %s2224_s26 }
 0x11b   : > { %s2518_s27 = scalar_lea.vmem %s2458_s9, %s2224_s26 }
 0x11c   : > { %v2297_v15 = vld [vmem:[#allocation2] sm:$0xff] }
 0x11d   : > { %v1883_v12 = vld [vmem:[%s2514_s22 + $0x8] sm:$0xff]   ;;  %v1884_v14 = vld [vmem:[%s2514_s22] sm:$0xff]   ;;  %v801_v16 = vpack.c.bf16 %v2297_v15, %v2297_v15  ;;  %s2517_s22 = scalar_lea.vmem %s2457_s8, %s2224_s26 }
 0x11e   : > { %1729 = vmatpush3.bf16.msra.mxu1 %v1883_v12 }
 0x11f   : > { %1730 = vmatprep.subr.bf16.mxu1 %v2032_v13 }
 0x122   : > { %1731 = vmatpush3.bf16.msra.mxu1 %v1884_v14 }
 0x123   : > { %1736 = vmatprep.subr.bf16.mxu1 %v2032_v13 }
 0x125   : > { %1733 = vmatmul.mubr.msk.bf16.vlgmr.msra.gmra.mxu1 %vm825_vm5, %v801_v16 }
 0x126   : > { %1738 = vmatprep.mubr.msk.bf16.mxu1 %vm2033_vm4, %v2032_v13 }
 0x1e5   : > { %v863_v18 = vpop.f32.mrf.mxu1 }
 0x1e6   : > { %v864_v19 = vadd.f32 %v1661_v17, %v863_v18  ;;  %v1673_v18 = vld [vmem:[%s2516_s18] ss:$0 sm:$0xff]  ;;  %s2520_s18 = sld [smem:[#allocation12_spill]] }
 0x1e7   : > { %v1734_v20 = vpop.f32.mrf.mxu1 }
 0x1e8   : > { %v869_v21 = vpack.c.bf16 %v864_v19, %v864_v19 }
 0x1e9   : > { %v866_v22 = vpop.f32.mrf.mxu1 }
 0x1ea   : > { %986 = vrot.lane.b32.xlu1 %v869_v21, %s2034_s28  ;;  %871 = vrot.lane.b32.xlu0 %v869_v21, %s2035_s23 }
 0x1eb   : > { %v1735_v23 = vpop.f32.mrf.mxu1 }
 0x1ec   : > { %p1688_p12 = scmp.ne.s32.totalorder %s2520_s18, 1 }
 0x1ee   : > { %988 = vrot.lane.b32.xlu0 %v869_v21, %s2036_s25  ;;  %s2519_s25 = scalar_lea.vmem %s2460_s11, %s2224_s26 }
 0x25c   : > { %v872_v24 = vpop.permute.xlu0 %871  ;;  %v987_v28 = vpop.permute.xlu1 %986 }
 0x25d   : > { %v878_v25 = vsel %vm873_vm6, %v872_v24, 0 }
 0x25e   : > { %1737 = vmatpush3.bf16.xpose.msra.mxu1 %v878_v25 }
 0x25f   : > { %1748 = vmatprep.subr.bf16.mxu1 %v2032_v13 }
 0x260   : > { %v989_v26 = vpop.permute.xlu0 %988 }
 0x261   : > { %v994_v27 = vsel %vm873_vm6, %v989_v26, 0 }
 0x265   : > { %1739 = vmatmul.mubr.msk.bf16.vlgmr.msra.gmra.mxu1 %vm873_vm6, %v869_v21 }
 0x266   : > { %1749 = vmatpush3.bf16.xpose.msra.mxu1 %v994_v27  ;;  %1750 = vmatprep.mubr.msk.bf16.mxu1 %vm2033_vm4, %v2032_v13 }
 0x267   : > { %1760 = vmatprep.subr.bf16.mxu1 %v2032_v13 }
 0x26d   : > { %1751 = vmatmul.mubr.msk.bf16.vlgmr.msra.gmra.mxu1 %vm873_vm6, %v987_v28 }
 0x26e   : > { %1762 = vmatprep.mubr.msk.bf16.mxu1 %vm2033_vm4, %v2032_v13  ;;  %1761 = vmatpush3.bf16.msra.mxu1 %v1886_v0 }
 0x26f   : > { %1772 = vmatprep.subr.bf16.mxu1 %v2032_v13 }
 0x325   : > { %v914_v29 = vpop.f32.mrf.mxu1 }
 0x326   : > { %v920_v30 = vmul.f32 0.25, %v914_v29 }
 0x327   : > { %v1740_v31 = vpop.f32.mrf.mxu1 }
 0x328   : > { %v922_v32 = vsel %vm921_vm7, %v920_v30, -inf  ;;  %v1887_v31 = vld [vmem:[%s2259_s19 + $0x8] sm:$0xff]  }
 0x329   : > { %923 = vmax.xlane.f32.xlu1 %v922_v32  ;;  %v917_v33 = vpop.f32.mrf.mxu1  ;;  %v1888_v32 = vld [vmem:[%s2259_s19] sm:$0xff]  }
 0x32a   : > { %v1890_v33 = vld [vmem:[%s2273_s0 + $0x10] sm:$0xff]  }
 0x32b   : > { %v1741_v34 = vpop.f32.mrf.mxu1 }
 0x32d   : > { %v1030_v35 = vpop.f32.mrf.mxu1 }
 0x32e   : > { %v1036_v36 = vmul.f32 0.25, %v1030_v35 }
 0x32f   : > { %v1752_v37 = vpop.f32.mrf.mxu1 }
 0x330   : > { %v1037_v38 = vsel %vm921_vm7, %v1036_v36, -inf }
 0x331   : > { %1038 = vmax.xlane.f32.xlu0 %v1037_v38  ;;  %v1033_v39 = vpop.f32.mrf.mxu1  ;;  %v1674_v38 = vld [vmem:[%s2517_s22] ss:$0 sm:$0xff] }
 0x333   : > { %v1753_v40 = vpop.f32.mrf.mxu1 }
 0x334   : > { %v1675_v40 = vld [vmem:[%s2518_s27] ss:$0 sm:$0xff] }
 0x3b2   : > { %v924_v41 = vpop.xlane.xlu1 %923 }
 0x3b3   : > { %v925_v42 = vsub.f32 %v920_v30, %v924_v41 }
 0x3b5   : > { %v926_v43 = vmul.f32 1.442695, %v925_v42 }
 0x3b7   : > { %1893 = vpow2.f32 %v926_v43 }
 0x3ba   : > { %v1039_v44 = vpop.xlane.xlu0 %1038 }
 0x3bb   : > { %v1040_v45 = vsub.f32 %v1036_v36, %v1039_v44  ;;  %v1891_v44 = vld [vmem:[%s2273_s0 + $0x8] sm:$0xff]  }
 0x3bd   : > { %v1041_v46 = vmul.f32 1.442695, %v1040_v45  ;;  %v1892_v45 = vld [vmem:[%s2273_s0] sm:$0xff]  }
 0x3bf   : > { %1895 = vpow2.f32 %v1041_v46  ;;  %v1676_v46 = vld [vmem:[%s2519_s25] ss:$0 sm:$0xff] }
 0x3c4   : > { %v1894_v47 = vpop.eup %1893 }
 0x3c5   : > { %v928_v48 = vsel %vm921_vm7, %v1894_v47, 0.0 }
 0x3c6   : > { %929 = vadd.xlane.f32.xlu0 %v928_v48 }
 0x3cc   : > { %v1896_v49 = vpop.eup %1895 }
 0x3cd   : > { %v1043_v50 = vsel %vm921_vm7, %v1896_v49, 0.0 }
 0x3ce   : > { %1044 = vadd.xlane.f32.xlu1 %v1043_v50 }
 0x3dc   : > { %934 = vrot.lane.b32.xlu0 %v869_v21, %s2037_s24 }
 0x3df   : > { %1049 = vrot.lane.b32.xlu1 %v869_v21, %s2038_s16 }
 0x44f   : > { %v930_v51 = vpop.xlane.xlu0 %929 }
 0x450   : > { %1897 = vrcp.f32 %v930_v51 }
 0x453   : > { %v935_v52 = vpop.permute.xlu0 %934 }
 0x454   : > { %v941_v53 = vsel %vm939_vm8, %v935_v52, 0 }
 0x455   : > { %1743 = vmatpush3.bf16.msra.mxu0 %v941_v53 }
 0x456   : > { %1754 = vmatprep.subr.bf16.mxu0 %v2032_v13 }
 0x457   : > { %v1045_v54 = vpop.xlane.xlu1 %1044 }
 0x458   : > { %1899 = vrcp.f32 %v1045_v54 }
 0x45b   : > { %v1050_v57 = vpop.permute.xlu1 %1049 }
 0x45c   : > { %v1055_v59 = vsel %vm939_vm8, %v1050_v57, 0 }
 0x45d   : > { %v1898_v55 = vpop.eup %1897 }
 0x45e   : > { %v932_v56 = vmul.f32 %v1898_v55, %v1894_v47 }
 0x460   : > { %v933_v58 = vpack.c.bf16 %v932_v56, %v932_v56 }
 0x462   : > { %1745 = vmatmul.mubr.msk.bf16.vlgmr.msra.gmra.mxu0 %vm921_vm7, %v933_v58 }
 0x463   : > { %1755 = vmatpush3.bf16.msra.mxu0 %v1055_v59  ;;  %1756 = vmatprep.mubr.msk.bf16.mxu0 %vm2033_vm4, %v2032_v13 }
 0x464   : > { %1766 = vmatprep.subr.bf16.mxu0 %v2032_v13 }
 0x465   : > { %v1900_v60 = vpop.eup %1899 }
 0x466   : > { %v1047_v61 = vmul.f32 %v1900_v60, %v1896_v49 }
 0x468   : > { %v1048_v62 = vpack.c.bf16 %v1047_v61, %v1047_v61 }
 0x46a   : > { %1757 = vmatmul.mubr.msk.bf16.vlgmr.msra.gmra.mxu0 %vm921_vm7, %v1048_v62 }
 0x46b   : > { %1768 = vmatprep.mubr.msk.bf16.mxu0 %vm2033_vm4, %v2032_v13  ;;  %1767 = vmatpush3.bf16.msra.mxu0 %v1885_v63 }
 0x46c   : > { %1780 = vmatprep.subr.bf16.mxu0 %v2032_v13 }
 0x522   : > { %v977_v1 = vpop.f32.mrf.mxu0 }
 0x523   : > { %v983_v2 = vpack.c.bf16 %v977_v1, %v977_v1 }
 0x524   : > { %v1746_v3 = vpop.f32.mrf.mxu0 }
 0x525   : > { %1769 = vmatmul.mubr.msk.bf16.vlgmr.msra.gmra.mxu0 %vm873_vm6, %v983_v2 }
 0x526   : > { %v980_v4 = vpop.f32.mrf.mxu0  ;;  %1788 = vmatprep.mubr.msk.bf16.mxu0 %vm2033_vm4, %v2032_v13 }
 0x528   : > { %v1747_v5 = vpop.f32.mrf.mxu0 }
 0x52a   : > { %v1091_v6 = vpop.f32.mrf.mxu0 }
 0x52b   : > { %v1097_v7 = vpack.c.bf16 %v1091_v6, %v1091_v6  ;;  %v1686_v6 = vld [vmem:[%s730_s21] ss:$0 sm:$0xff] }
 0x52c   : > { %v1758_v8 = vpop.f32.mrf.mxu0 }
 0x52d   : > { %1763 = vmatmul.mubr.msk.bf16.vlgmr.msra.gmra.mxu1 %vm873_vm6, %v1097_v7  ;;  %v1687_v8 = vld [vmem:[%s733_s4] ss:$0 sm:$0xff] }
 0x52e   : > { %v1094_v9 = vpop.f32.mrf.mxu0  ;;  %1776 = vmatprep.mubr.msk.bf16.mxu1 %vm2033_vm4, %v2032_v13  ;;  %1773 = vmatpush3.bf16.msra.mxu1 %v1887_v31 }
 0x52f   : > { %1774 = vmatprep.subr.bf16.mxu1 %v2032_v13 }
 0x530   : > { %v1759_v10 = vpop.f32.mrf.mxu0 }
 0x532   : > { %1775 = vmatpush3.bf16.msra.mxu1 %v1888_v32 }
 0x5e5   : > { %v1192_v11 = vpop.f32.mrf.mxu0 }
 0x5e7   : > { %v1770_v12 = vpop.f32.mrf.mxu0 }
 0x5e9   : > { %v1195_v14 = vpop.f32.mrf.mxu0 }
 0x5eb   : > { %v1771_v16 = vpop.f32.mrf.mxu0 }
 0x5ed   : > { %v1143_v17 = vpop.f32.mrf.mxu1 }
 0x5ee   : > { %v1193_v19 = vadd.f32 %v1192_v11, %v1143_v17 }
 0x5ef   : > { %v1764_v20 = vpop.f32.mrf.mxu1 }
 0x5f0   : > { %v1205_v21 = vadd.f32 %v1673_v18, %v1193_v19 }
 0x5f1   : > { %v1146_v22 = vpop.f32.mrf.mxu1 }
 0x5f2   : > { %v1206_v23 = vadd.f32 %v1205_v21, %v2297_v15  ;;  %v1889_v15 = vld [vmem:[%s2273_s0 + $0x18] sm:$0xff]  }
 0x5f3   : > { %v1765_v24 = vpop.f32.mrf.mxu1  ;;  %1781 = vmatpush3.bf16.msra.mxu0 %v1889_v15 }
 0x5f4   : > { %v1209_v25 = vsel %vm825_vm5, %v1206_v23, 0.0  ;;  %1782 = vmatprep.subr.bf16.mxu0 %v2032_v13 }
 0x5f5   : > { %1210 = vadd.xlane.f32.xlu1 %v1209_v25 }
 0x5f7   : > { %1783 = vmatpush3.bf16.msra.mxu0 %v1890_v33 }
 0x5f8   : > { %1784 = vmatprep.subr.bf16.mxu0 %v2032_v13 }
 0x5fb   : > { %1785 = vmatpush3.bf16.msra.mxu0 %v1891_v44 }
 0x5fc   : > { %1786 = vmatprep.subr.bf16.mxu0 %v2032_v13  ;;  %v1680_v13 = vld [vmem:[%s727_s20] ss:$0 sm:$0xff] }
 0x5ff   : > { %1787 = vmatpush3.bf16.msra.mxu0 %v1892_v45 }
 0x67e   : > { %v1211_v26 = vpop.xlane.xlu1 %1210 }
 0x67f   : > { %v1213_v27 = vmul.f32 0.03125, %v1211_v26 }
 0x681   : > { %v1214_v28 = vsub.f32 %v1206_v23, %v1213_v27 }
 0x683   : > { %v1215_v29 = vmul.f32 %v1214_v28, %v1214_v28 }
 0x685   : > { %v1216_v30 = vsel %vm825_vm5, %v1215_v29, 0.0 }
 0x686   : > { %1217 = vadd.xlane.f32.xlu0 %v1216_v30 }
 0x70f   : > { %v1218_v34 = vpop.xlane.xlu0 %1217 }
 0x710   : > { %v1219_v35 = vmul.f32 0.03125, %v1218_v34 }
 0x712   : > { %v1220_v36 = vadd.f32 1e-05, %v1219_v35 }
 0x714   : > { %1901 = vrsqrt.f32 %v1220_v36 }
 0x721   : > { %v1902_v37 = vpop.eup %1901 }
 0x722   : > { %v1222_v39 = vmul.f32 %v1902_v37, %v1214_v28 }
 0x724   : > { %v1229_v41 = vmul.f32 %v1674_v38, %v1222_v39 }
 0x726   : > { %v1236_v42 = vadd.f32 %v1675_v40, %v1229_v41 }
 0x728   : > { %v1237_v43 = vpack.c.bf16 %v1236_v42, %v1236_v42 }
 0x72a   : > { %1777 = vmatmul.mubr.msk.bf16.vlgmr.msra.gmra.mxu1 %vm825_vm5, %v1237_v43 }
 0x7ea   : > { %v1298_v47 = vpop.f32.mrf.mxu1 }
 0x7eb   : > { %v1299_v48 = vadd.f32 %v1676_v46, %v1298_v47 }
 0x7ec   : > { %v1778_v49 = vpop.f32.mrf.mxu1 }
 0x7ed   : > { %v1304_v50 = vmax.f32 %v1299_v48, 0.0 }
 0x7ee   : > { %v1301_v51 = vpop.f32.mrf.mxu1 }
 0x7ef   : > { %v1305_v52 = vpack.c.bf16 %v1304_v50, %v1304_v50 }
 0x7f0   : > { %v1779_v53 = vpop.f32.mrf.mxu1 }
 0x7f1   : > { %1789 = vmatmul.mubr.msk.bf16.vlgmr.msra.gmra.mxu0 %vm1345_vm9, %v1305_v52 }
 0x8b1   : > { %v1383_v54 = vpop.f32.mrf.mxu0 }
 0x8b2   : > { %v1384_v55 = vadd.f32 %v1680_v13, %v1383_v54 }
 0x8b3   : > { %v1790_v56 = vpop.f32.mrf.mxu0 }
 0x8b4   : > { %v1389_v57 = vadd.f32 %v1384_v55, %v1236_v42 }
 0x8b5   : > { %v1386_v58 = vpop.f32.mrf.mxu0 }
 0x8b6   : > { %v1392_v59 = vsel %vm825_vm5, %v1389_v57, 0.0 }
 0x8b7   : > { %1393 = vadd.xlane.f32.xlu0 %v1392_v59  ;;  %v1791_v60 = vpop.f32.mrf.mxu0 }
 0x940   : > { %v1394_v61 = vpop.xlane.xlu0 %1393 }
 0x941   : > { %v1395_v62 = vmul.f32 0.03125, %v1394_v61 }
 0x943   : > { %v1396_v63 = vsub.f32 %v1389_v57, %v1395_v62 }
 0x945   : > { %v1397_v0 = vmul.f32 %v1396_v63, %v1396_v63 }
 0x947   : > { %v1398_v1 = vsel %vm825_vm5, %v1397_v0, 0.0 }
 0x948   : > { %1399 = vadd.xlane.f32.xlu1 %v1398_v1 }
 0x9d1   : > { %v1400_v2 = vpop.xlane.xlu1 %1399 }
 0x9d2   : > { %v1401_v3 = vmul.f32 0.03125, %v1400_v2 }
 0x9d4   : > { %v1402_v4 = vadd.f32 1e-05, %v1401_v3 }
 0x9d6   : > { %1903 = vrsqrt.f32 %v1402_v4 }
 0x9e3   : > { %v1904_v5 = vpop.eup %1903 }
 0x9e4   : > { %v1404_v7 = vmul.f32 %v1904_v5, %v1396_v63 }
 0x9e6   : > { %v1411_v9 = vmul.f32 %v1686_v6, %v1404_v7  ;;  %1423 = sbr.rel (%p1688_p12) target bundleno = 2540 (0x9ec), region = 96 }
 0x9e8   : > { %v1418_v10 = vadd.f32 %v1687_v8, %v1411_v9 }
 0x9ea   : > { %1419 = vst.msk [vmem:[#allocation2] sm:$0xff] %vm825_vm5, %v1418_v10 }
 0x9eb   : > { %1424 = vst.msk [vmem:[%s685_s3] sm:$0xff] %vm825_vm5, %v1418_v10 }
 0x9ec PF: > { %s2521_s19 = sld [smem:[#allocation13_spill]]  ;;  %s1439_s27 = sshll.u32 %s685_s3, 4  ;;  %s1440_s27 = int_to_ptr.vmem [resolvable:$true] %s1439_s27 }
 0x9ed   : > { %s2522_s21 = sld [smem:[#allocation10_spill]]  ;;  %s1931_s25 = scalar_lea.vmem %s1440_s27, 128 }
 0x9ee   : > { %s2524_s4 = sld [smem:[#allocation29_spill]]  ;;  %p1932_p13 = scmp.ne.s32.totalorder %s1440_s27, %s1931_s25 }
 0x9ef   : > { %s2039_s24 = smov [#allocation6]  }
 0x9f0   : > { %p1933_p0 = pnand %p1932_p13, %p2175_p3  ;;  %s1935_s16 = sshll.u32 %s2039_s24, 4  ;;  %s1936_s16 = int_to_ptr.vmem [resolvable:$false] %s1935_s16 }
 0x9f1   : > { %s1937_s20 = scalar_lea.vmem %s1936_s16, 256  ;;  %p1938_p2 = scmp.lt.s32.totalorder %s1440_s27, %s1936_s16 }
 0x9f2   : > { %s1690_s22 = sshll.u32 %s2521_s19, 7  ;;  %p1934_p1 = pneg %p1933_p0 }
 0x9f3   : > { %s2525_s28 = sand.u32 1, %s2522_s21   ;;  %p1939_p4 = scmp.lt.s32.totalorder %s1937_s20, %s1931_s25 }
 0x9f4   : > { %s1437_s2 = scalar_lea.hbm %s2524_s4, %s1690_s22  ;;  %s1426_s23 = scalar_lea.sflag [#allocation5], %s2525_s28 }
 0x9f5   : > { %p1940_p5 = por %p1939_p4, %p1938_p2 }
 0x9f7   : > { %p1941_p6 = pnand %p1940_p5, %p1934_p1 }
 0x9f9   : > { %1944 = shalt.err (!%p1941_p6)
}
 0x9fa   : > { %s1945_s0 = scalar_lea.hbm %s1437_s2, 128  ;;  %s1949_s1 = scalar_lea.hbm %s2524_s4, 256 }
 0x9fb   : > { %p1946_p7 = scmp.ne.s32.totalorder %s1437_s2, %s1945_s0  ;;  %p1950_p11 = scmp.lt.s32.totalorder %s1437_s2, %s2524_s4 }
 0x9fc   : > { %p1951_p10 = scmp.lt.s32.totalorder %s1949_s1, %s1945_s0 }
 0x9fd   : > { %p1947_p8 = pnand %p1946_p7, %p2175_p3 }
 0x9fe   : > { %p1952_p12 = por %p1951_p10, %p1950_p11 }
 0x9ff   : > { %p1948_p9 = pneg %p1947_p8 }
 0xa01   : > { %p1953_p13 = pnand %p1952_p12, %p1948_p9 }
 0xa03   : > { %1956 = shalt.err (!%p1953_p13)
}
 0xa04   : > { %1796 = dma.vmem_to_hbm [thread:$0]  (%p2175_p3), %s1440_s27, 128, %s1437_s2, %s1426_s23  }
 0xa05 PF: > { %s2526_s19 = sld [smem:[#allocation16_spill]] }
 0xa06   : > { %s2527_s21 = sld [smem:[#allocation9_spill]] }
 0xa07   : > { %s2528_s22 = sld [smem:[#allocation20_spill]] }
 0xa0b   : > { %p1808_p0 = scmp.ge.s32.totalorder %s2526_s19, 2 }
 0xa0c   : > { %s1451_s29 = sand.u32 1, %s2527_s21  }
 0xa0d   : > { %p2529_p1 = scmp.ne.s32.totalorder %s2528_s22, 0  ;;  %s1452_s26 = scalar_lea.sflag [#allocation5], %s1451_s29 }
 0xa0f   : > { %p1803_p2 = pnand %p1808_p0, %p2529_p1 }
 0xa11   : > { %p1804_p4 = pneg %p1803_p2 }
 0xa13   : > { %1994 = dma.done.wait (%p1804_p4), %s1452_s26, 128  }
 0xa14   : > { %1996 = vsyncadd (%p1804_p4), %s1452_s26, 4294967168  ;;  %s30_s28 = sadd.s32 1, %s2526_s19   ;;  %s2530_s21 = sld [smem:[#allocation10_spill]] }
 0xa15   : > { %p27_p5 = scmp.ge.s32.totalorder %s30_s28, 6   ;;  %s2531_s22 = sld [smem:[#allocation11_spill]] }
 0xa16   : > { %s2532_s23 = sld [smem:[#allocation21_spill]] }
 0xa17   : > { %s2533_s24 = sld [smem:[#allocation14_spill]]  ;;  %29 = sbr.rel (!%p27_p5) target bundleno = 14 (0xe), region = 168 }
 0xa18   : > { %s2534_s25 = sld [smem:[#allocation15_spill]] }
 0xa19   : > { %s2535_s26 = sld [smem:[#allocation17_spill]] }
 0xa1a   : > { %s2536_s27 = sld [smem:[#allocation19_spill]] }
 0xa1c   :  { %1457 = vsyncpa [#allocation4], 1 }
 0xa1d   :  { %1459 = vsyncpa [#allocation4 + $0x1], 1 }
 0xa1e   :  { %1460 = vsyncpa [#allocation5], 1 }
 0xa1f   :  { %1462 = vsyncpa [#allocation5 + $0x1], 1 }

</bundles_post_ra>
